<compile_context>
chip_gen: v7x
topology: tpu7x:2x2x1
jax: 0.10.0
libtpu: 0.0.40
codegen_flags: <defaults>
</compile_context>

<pallas_src>
import jax
import jax.numpy as jnp
from jax.experimental import pallas as pl
from jax.experimental.pallas import tpu as pltpu


def _round_up(x, m):
    return ((x + m - 1) // m) * m


def _critic_kernel(b_ref, z_ref, w_ref, o_ref):
    # b_ref: (1,) SMEM scalar bias
    # z_ref: (block_b, D) VMEM row tile of z
    # w_ref: (1, D) VMEM lane-dense weight row
    # o_ref: (1, 1, block_b) VMEM lane-dense output row
    z = z_ref[...]
    w = w_ref[...]
    # w @ z^T : contract D on both operands -> (1, block_b) lane-dense row.
    # (Same trans_b pattern as q @ k^T in flash attention; f32 accumulation.)
    acc = jax.lax.dot_general(
        w, z,
        dimension_numbers=(((1,), (1,)), ((), ())),
        preferred_element_type=jnp.float32,
    )
    o_ref[0] = (acc + b_ref[0]).astype(o_ref.dtype)


def _choose_block_b(batch, feat, itemsize):
    # z tiles are double-buffered by the BlockSpec pipeline; keep the pair
    # well inside scoped-VMEM defaults (16 MiB v5e, 32 MiB v6e/v7x).
    vmem_budget = 8 * 1024 * 1024
    max_rows = max(128, (vmem_budget // (2 * feat * itemsize)) // 128 * 128)
    bb = min(1024, _round_up(batch, 128), max_rows)
    # Ensure >= 2 grid steps for larger batches (megacore sharding on v7x).
    if batch > 256:
        bb = min(bb, _round_up(pl.cdiv(batch, 2), 128))
    return bb


def critic_forward(z, weight, bias, *, block_b=None):
    """v = z @ weight.T + bias, matching nn.Linear(latent_dim, 1).

    z:      [B, D] float32
    weight: [1, D] float32  (PyTorch nn.Linear weight layout)
    bias:   [1]    float32
    returns [B, 1] float32
    """
    B, D = z.shape
    assert weight.shape == (1, D)
    assert bias.shape == (1,)

    if block_b is None:
        block_b = _choose_block_b(B, D, z.dtype.itemsize)
    assert block_b % 128 == 0, "block_b must be a multiple of 128 (lane-dense output)"

    grid_b = pl.cdiv(B, block_b)
    b_pad = grid_b * block_b

    itemsize = z.dtype.itemsize
    cost = pl.CostEstimate(
        flops=2 * B * D,
        transcendentals=0,
        bytes_accessed=(B * D + D + 1 + B) * itemsize,
    )

    out = pl.pallas_call(
        _critic_kernel,
        out_shape=jax.ShapeDtypeStruct((grid_b, 1, block_b), z.dtype),
        grid_spec=pltpu.PrefetchScalarGridSpec(
            num_scalar_prefetch=0,
            grid=(grid_b,),
            in_specs=[
                pl.BlockSpec(memory_space=pltpu.SMEM),           # bias scalar
                pl.BlockSpec((block_b, D), lambda i: (i, 0)),    # z row tile
                pl.BlockSpec((1, D), lambda i: (0, 0)),          # weight row
            ],
            out_specs=pl.BlockSpec((1, 1, block_b), lambda i: (i, 0, 0)),
        ),
        compiler_params=pltpu.CompilerParams(
            dimension_semantics=("parallel",),
        ),
        cost_estimate=cost,
    )(bias, z, weight)

    # (grid_b, 1, block_b) lane-dense slab -> flat padded vector -> [B, 1].
    # Tail entries (computed from out-of-bounds garbage rows of the last z
    # tile) are sliced away here.
    v = out.reshape(b_pad)[:B].reshape(B, 1)
    return v


if __name__ == "__main__":
    key = jax.random.PRNGKey(0)
    k_z, k_w, k_b = jax.random.split(key, 3)

    batch = 8
    latent_dim = 32

    # Deterministic synthetic parameters (nn.Linear(latent_dim, 1) shapes).
    z = jax.random.normal(k_z, (batch, latent_dim), dtype=jnp.float32)
    weight = jax.random.normal(k_w, (1, latent_dim), dtype=jnp.float32) * 0.1
    bias = jax.random.normal(k_b, (1,), dtype=jnp.float32) * 0.1

    v = jax.block_until_ready(critic_forward(z, weight, bias))
    v_ref = z @ weight.T + bias
    assert v.shape == (batch, 1)
    assert jnp.allclose(v, v_ref, atol=1e-5, rtol=1e-5)

    # Second check: non-multiple batch with a multi-step grid, exercising the
    # tiled / padded-tail path.
    batch2 = 300
    z2 = jax.random.normal(k_z, (batch2, latent_dim), dtype=jnp.float32)
    v2 = jax.block_until_ready(critic_forward(z2, weight, bias, block_b=128))
    v2_ref = z2 @ weight.T + bias
    assert v2.shape == (batch2, 1)
    assert jnp.allclose(v2, v2_ref, atol=1e-5, rtol=1e-5)

    print("KERNEL_OK")
</pallas_src>

<mosaic_0001>
module attributes {stable_mosaic.version = 11 : i64} {
  func.func @_critic_kernel(%arg0: i32, %arg1: memref<1xf32, #tpu.memory_space<smem>>, %arg2: memref<128x32xf32, #tpu.memory_space<vmem>>, %arg3: memref<1x32xf32, #tpu.memory_space<vmem>>, %arg4: memref<1x1x128xf32, #tpu.memory_space<vmem>>) attributes {dimension_semantics = [#tpu.dimension_semantics<parallel>], iteration_bounds = array<i64: 1>, scalar_prefetch = 0 : i64, scratch_operands = 0 : i64, tpu.core_type = #tpu.core_type<tc>, window_params = [{transform_indices = @transform_0, window_bounds = array<i64: 1>}, {transform_indices = @transform_1, window_bounds = array<i64: 128, 32>}, {pipeline_mode = #tpu.pipeline_mode<synchronous>, transform_indices = @transform_2, window_bounds = array<i64: 1, 32>}, {transform_indices = @transform_3, window_bounds = array<i64: 1, 1, 128>}]} {
    %c0 = arith.constant 0 : index
    %c0_0 = arith.constant 0 : index
    %0 = vector.load %arg2[%c0, %c0_0] : memref<128x32xf32, #tpu.memory_space<vmem>>, vector<128x32xf32>
    %c0_1 = arith.constant 0 : index
    %c0_2 = arith.constant 0 : index
    %1 = vector.load %arg3[%c0_1, %c0_2] : memref<1x32xf32, #tpu.memory_space<vmem>>, vector<1x32xf32>
    %cst = arith.constant dense<0.000000e+00> : vector<1x128xf32>
    %2 = tpu.matmul %1, %0, %cst {dimension_numbers = #tpu.dot_dimension_numbers<[1], [1], [0], [0], [0, 0, 1, 0], [], []>} : vector<1x32xf32>, vector<128x32xf32>, vector<1x128xf32> -> vector<1x128xf32>
    %c0_3 = arith.constant 0 : index
    %3 = memref.load %arg1[%c0_3] : memref<1xf32, #tpu.memory_space<smem>>
    %4 = vector.broadcast %3 : f32 to vector<1x128xf32>
    %5 = arith.addf %2, %4 : vector<1x128xf32>
    %c0_4 = arith.constant 0 : index
    %c0_5 = arith.constant 0 : index
    %c0_6 = arith.constant 0 : index
    %6 = vector.load %arg4[%c0_4, %c0_5, %c0_6] : memref<1x1x128xf32, #tpu.memory_space<vmem>>, vector<1x1x128xf32>
    %7 = vector.shape_cast %6 : vector<1x1x128xf32> to vector<1x128xf32>
    %8 = vector.shape_cast %5 : vector<1x128xf32> to vector<1x1x128xf32>
    tpu.vector_store %arg4[%c0_4, %c0_5, %c0_6], %8 {strides = array<i32>} : memref<1x1x128xf32, #tpu.memory_space<vmem>>, vector<1x1x128xf32>,
    return
  }
  func.func @transform_0(%arg0: i32) -> i32 {
    %c0_i32 = arith.constant 0 : i32
    %c0_i32_0 = arith.constant 0 : i32
    return %c0_i32 : i32
  }
  func.func @transform_1(%arg0: i32) -> (i32, i32) {
    %c0_i32 = arith.constant 0 : i32
    %c0_i32_0 = arith.constant 0 : i32
    return %arg0, %c0_i32 : i32, i32
  }
  func.func @transform_2(%arg0: i32) -> (i32, i32) {
    %c0_i32 = arith.constant 0 : i32
    %c0_i32_0 = arith.constant 0 : i32
    %c0_i32_1 = arith.constant 0 : i32
    return %c0_i32, %c0_i32_0 : i32, i32
  }
  func.func @transform_3(%arg0: i32) -> (i32, i32, i32) {
    %c0_i32 = arith.constant 0 : i32
    %c0_i32_0 = arith.constant 0 : i32
    %c0_i32_1 = arith.constant 0 : i32
    return %arg0, %c0_i32, %c0_i32_0 : i32, i32, i32
  }
}

</mosaic_0001>

<bundles_post_ra>
// kernel: tpu_custom_call.1
= control target key start
LH: loop header
LB: loop body
LE: loop exit
PB: predicated region body
PF: predicated region fallthrough
CT: control target
= control target key end

     0   :  { %9 = vsyncpa [#allocation4], 0  ;;  %s423_s0 = inlined_call_operand.<no memory space> [shape: f32[1], index: 0, kind: input, shape index: {}]   ;;  %s424_s1 = inlined_call_operand.hbm [shape: f32[8,32], index: 1, kind: input, shape index: {}]   ;;  %s425_s2 = inlined_call_operand.vmem [shape: f32[1,32], index: 2, kind: input, shape index: {}]   ;;  %s426_s3 = inlined_call_operand.hbm [shape: f32[1,1,128], index: 3, kind: output, shape index: {}]  }
   0x1   :  { %10 = vsyncpa [#allocation5], 0 }
   0x2   :  { %17 = vsyncadd [#allocation4], 1920  ;;  %s343_s12 = smov [#allocation3]   ;;  %s295_s16 = scalar_lea.hbm %s424_s1, 128 }
   0x3   :  { %s18_s13 = sshll.u32 %s343_s12, 4  ;;  %p296_p0 = scmp.ne.s32.totalorder %s424_s1, %s295_s16  ;;  %s19_s13 = int_to_ptr.vmem [resolvable:$true] %s18_s13 }
   0x4   :  { %p299_p1 = scmp.lt.u32.totalorder %s295_s16, %s424_s1 }
   0x6   :  { %p301_p2 = pnand %p299_p1, %p296_p0 }
   0x8   :  { %304 = shalt.err (!%p301_p2)
}
   0x9   :  { %s305_s21 = scalar_lea.vmem %s19_s13, 128  ;;  %s309_s22 = scalar_lea.vmem %s19_s13, 2048 }
   0xa   :  { %p306_p3 = scmp.ne.s32.totalorder %s19_s13, %s305_s21  ;;  %p310_p4 = scmp.lt.s32.totalorder %s19_s13, %s19_s13 }
   0xb   :  { %p311_p5 = scmp.lt.s32.totalorder %s309_s22, %s305_s21 }
   0xd   :  { %p312_p6 = por %p311_p5, %p310_p4 }
   0xf   :  { %p313_p7 = pnand %p312_p6, %p306_p3 }
  0x11   :  { %316 = shalt.err (!%p313_p7)
}
  0x12   :  { %s344_s23 = smov 128   ;;  %s345_s24 = smov 8  }
  0x13   :  { %24 = dma.hbm_to_vmem [thread:$0]  %s424_s1, 128, %s19_s13, [#allocation4], %s344_s23, %s344_s23, %s345_s24  }
  0x14   :  { %339 = dma.done.wait [#allocation4], 2048  }
  0x15   :  { %340 = vsyncadd [#allocation4], 4294965248  ;;  %v346_v0 = vmov 0.0|0.0   ;;  %vm347_vm0 = vmmov 0   ;;  %v348_v1 = vmov 0.0   ;;  %vm49_vm1 = vcmask 261120  }
  0x16   :  { %256 = vmatprep.subr.bf16.mxu0 %v346_v0  ;;  %253 = vmatprep.mubr.msk.f32.mxu0 %vm347_vm0, %v348_v1  ;;  %v30_v2 = vld [vmem:[#allocation3] sm:$0xff]  ;;  %v31_v3 = vld [vmem:[#allocation3 + $0x8] sm:$0xff]  ;;  %vm384_vm2 = vmpackc.low %vm49_vm1, %vm49_vm1  ;;  %v48_v28 = vstv %s423_s0  ;;  %s349_s30 = smov [#allocation6]  }
  0x17   :  { %v257_v5 = vpack.c.bf16 %v31_v3, %v30_v2  ;;  %v32_v6 = vld [vmem:[#allocation3 + $0x10] sm:$0xff]  ;;  %v33_v7 = vld [vmem:[#allocation3 + $0x18] sm:$0xff]  ;;  %v34_v9 = vld [vmem:[#allocation3 + $0x20] sm:$0xff]  ;;  %s178_s4 = sshll.u32 %s349_s30, 4  ;;  %s179_s4 = int_to_ptr.vmem [resolvable:$true] %s178_s4 }
  0x18   :  { %v261_v8 = vpack.c.bf16 %v33_v7, %v32_v6  ;;  %v35_v10 = vld [vmem:[#allocation3 + $0x28] sm:$0xff]  ;;  %v36_v12 = vld [vmem:[#allocation3 + $0x30] sm:$0xff]  ;;  %v37_v13 = vld [vmem:[#allocation3 + $0x38] sm:$0xff]  ;;  %s317_s5 = scalar_lea.vmem %s179_s4, 16  ;;  %s321_s6 = scalar_lea.vmem %s179_s4, 32 }
  0x19   :  { %259 = vmatpush3.bf16.xpose.msk.msra.mxu0 %vm384_vm2, %v257_v5  ;;  %v265_v11 = vpack.c.bf16 %v35_v10, %v34_v9  ;;  %v269_v14 = vpack.c.bf16 %v37_v13, %v36_v12  ;;  %v38_v15 = vld [vmem:[#allocation3 + $0x40] sm:$0xff]  ;;  %v39_v16 = vld [vmem:[#allocation3 + $0x48] sm:$0xff]  ;;  %v40_v18 = vld [vmem:[#allocation3 + $0x50] sm:$0xff]  ;;  %p318_p8 = scmp.ne.s32.totalorder %s179_s4, %s317_s5  ;;  %p322_p9 = scmp.lt.s32.totalorder %s179_s4, %s179_s4 }
  0x1a   :  { %260 = vmatprep.subr.bf16.mxu0 %v346_v0  ;;  %v273_v17 = vpack.c.bf16 %v39_v16, %v38_v15  ;;  %v41_v19 = vld [vmem:[#allocation3 + $0x58] sm:$0xff]  ;;  %v42_v21 = vld [vmem:[#allocation3 + $0x60] sm:$0xff]  ;;  %v43_v22 = vld [vmem:[#allocation3 + $0x68] sm:$0xff]  ;;  %p323_p10 = scmp.lt.s32.totalorder %s321_s6, %s317_s5 }
  0x1b   :  { %v277_v20 = vpack.c.bf16 %v41_v19, %v40_v18  ;;  %v281_v23 = vpack.c.bf16 %v43_v22, %v42_v21  ;;  %v44_v24 = vld [vmem:[#allocation3 + $0x70] sm:$0xff]  ;;  %v45_v25 = vld [vmem:[#allocation3 + $0x78] sm:$0xff]  ;;  %v46_v27 = vld [vmem:[%s425_s2] sm:$0x1] }
  0x1c   :  { %v285_v26 = vpack.c.bf16 %v45_v25, %v44_v24  ;;  %p324_p11 = por %p323_p10, %p322_p9 }
  0x1e   :  { %p325_p12 = pnand %p324_p11, %p318_p8 }
  0x21   :  { %263 = vmatpush3.bf16.xpose.msk.msra.mxu0 %vm384_vm2, %v261_v8 }
  0x22   :  { %264 = vmatprep.subr.bf16.mxu0 %v346_v0 }
  0x29   :  { %267 = vmatpush3.bf16.xpose.msk.msra.mxu0 %vm384_vm2, %v265_v11 }
  0x2a   :  { %268 = vmatprep.subr.bf16.mxu0 %v346_v0 }
  0x31   :  { %271 = vmatpush3.bf16.xpose.msk.msra.mxu0 %vm384_vm2, %v269_v14 }
  0x32   :  { %272 = vmatprep.subr.bf16.mxu0 %v346_v0 }
  0x39   :  { %275 = vmatpush3.bf16.xpose.msk.msra.mxu0 %vm384_vm2, %v273_v17 }
  0x3a   :  { %276 = vmatprep.subr.bf16.mxu0 %v346_v0 }
  0x41   :  { %279 = vmatpush3.bf16.xpose.msk.msra.mxu0 %vm384_vm2, %v277_v20 }
  0x42   :  { %280 = vmatprep.subr.bf16.mxu0 %v346_v0 }
  0x49   :  { %283 = vmatpush3.bf16.xpose.msk.msra.mxu0 %vm384_vm2, %v281_v23 }
  0x4a   :  { %284 = vmatprep.subr.bf16.mxu0 %v346_v0 }
  0x51   :  { %287 = vmatpush3.bf16.xpose.msk.msra.mxu0 %vm384_vm2, %v285_v26 }
  0x58   :  { %254 = vmatmul.mubr.msk.f32.vlgmr.msra.gmra.mrb[0].mxu0 %vm49_vm1, %v46_v27 }
 0x12b   :  { %v167_v29 = vpop.f32.mrb[0].mxu0 }
 0x12c   :  { %v168_v30 = vadd.f32 %v167_v29, %v48_v28  ;;  %v255_v31 = vpop.f32.mrb[1].mxu0 }
 0x12e   :  { %171 = vst [vmem:[#allocation6] sm:$0x1] %v168_v30 }
 0x12f   :  { %328 = shalt.err (!%p325_p12)
}
 0x130   :  { %s329_s8 = scalar_lea.hbm %s426_s3, 16 }
 0x131   :  { %p330_p13 = scmp.ne.s32.totalorder %s426_s3, %s329_s8  ;;  %p333_p0 = scmp.lt.u32.totalorder %s329_s8, %s426_s3 }
 0x133   :  { %p335_p1 = pnand %p333_p0, %p330_p13 }
 0x135   :  { %338 = shalt.err (!%p335_p1)
}
 0x136   :  { %181 = dma.vmem_to_hbm [thread:$0]  %s179_s4, 16, %s426_s3, [#allocation5]  }
 0x137   :  { %341 = dma.done.wait [#allocation5], 16  }
 0x138   :  { %342 = vsyncadd [#allocation5], 4294967280 }
 0x139   :  { %185 = vsyncpa [#allocation4], 1 }
 0x13a   :  { %186 = vsyncpa [#allocation5], 1 }

</bundles_post_ra>
